<compile_context>
chip_gen: v6e
topology: v6e:2x2x1
jax: 0.10.0
libtpu: 0.0.40
codegen_flags: <defaults>
</compile_context>

<pallas_src>
import jax
import jax.numpy as jnp
import numpy as np
from jax import lax
from jax.experimental import pallas as pl
from jax.experimental.pallas import tpu as pltpu


def _attnpool_kernel(x_ref, pos0_ref, posr_ref, rsel_ref, rselt_ref,
                     seg_ref, segt_ref,
                     wq_ref, wk_ref, wv_ref,
                     bq_ref, bk_ref, bv_ref,
                     wc_ref, bc_ref, o_ref):
    f32 = jnp.float32
    x = x_ref[...]                        # (R, E) spatial tokens, compute dtype
    wdt = x.dtype
    R, E = x.shape
    rsel = rsel_ref[...]                  # (R, Bt)  batch-row broadcast selector
    rselT = rselt_ref[...]                # (Bt, R)  batch-segment sum selector
    seg = seg_ref[...]                    # (E, nh)  lane -> head reduce
    segT = segt_ref[...]                  # (nh, E)  head -> lane broadcast
    Bt = rselT.shape[0]
    HW = R // Bt
    nh = seg.shape[1]
    dn = (((1,), (1,)), ((), ()))         # contract dim1 . dim1  (x @ W^T)

    def linear(lhs, w_ref, b_ref, out_dtype):
        y = lax.dot_general(lhs, w_ref[...], dn, preferred_element_type=f32)
        return (y + b_ref[...]).astype(out_dtype)

    # ---- token build: token 0 = spatial mean + pos[0]; spatial rows = x + pos[1:]
    tok0_f = (jnp.dot(rselT, x, preferred_element_type=f32) * (1.0 / HW)
              + pos0_ref[...])                                          # (Bt, E) f32
    tok0 = tok0_f.astype(wdt)             # hoisted cast, reused by q/k/v projections
    tokr = x + posr_ref[...]                                            # (R, E) wdt

    # ---- projections (1/sqrt(head_dim) pre-folded into Wq/bq); q only for token 0
    q0 = linear(tok0, wq_ref, bq_ref, wdt)                              # (Bt, E)
    k0 = linear(tok0, wk_ref, bk_ref, wdt)                              # (Bt, E)
    kr = linear(tokr, wk_ref, bk_ref, wdt)                              # (R, E)

    # ---- per-head scores of query 0 against every key (f32 accumulation)
    s0 = jnp.dot(q0 * k0, seg, preferred_element_type=f32)              # (Bt, nh)
    q0r = jnp.dot(rsel, q0, preferred_element_type=f32).astype(wdt)     # (R, E)
    sr = jnp.dot(q0r * kr, seg, preferred_element_type=f32)             # (R, nh)

    # ---- numerically stable softmax over the L = HW + 1 keys of each (row, head)
    # Batch rows of sr are contiguous -> contiguous segment max/sum, no mask needed.
    sr3 = sr.reshape(Bt, HW, nh)
    m = jnp.maximum(s0, jnp.max(sr3, axis=1))                           # (Bt, nh)
    p0 = jnp.exp(s0 - m)                                                # (Bt, nh)
    pr3 = jnp.exp(sr3 - m[:, None, :])                                  # (Bt, HW, nh)
    inv = pl.reciprocal(p0 + jnp.sum(pr3, axis=1), approx=True)         # (Bt, nh)
    p0n = (p0 * inv).astype(wdt)                                        # (Bt, nh)
    prn = (pr3 * inv[:, None, :]).reshape(R, nh).astype(wdt)            # (R, nh)

    # ---- values (computed late to keep peak (R, E) liveness low) and PV sums
    v0 = linear(tok0, wv_ref, bv_ref, f32)                              # (Bt, E)
    vr = linear(tokr, wv_ref, bv_ref, wdt)                              # (R, E)
    pv_r = jnp.dot(prn, segT, preferred_element_type=f32).astype(wdt) * vr
    attn = (jnp.dot(p0n, segT, preferred_element_type=f32) * v0
            + jnp.dot(rselT, pv_r, preferred_element_type=f32))         # (Bt, E) f32

    # ---- output projection (Wc zero-padded to a lane-dense width by the wrapper)
    o_ref[...] = linear(attn.astype(wdt), wc_ref, bc_ref, o_ref.dtype)


def attention_pool_2d(x, params, num_heads, *, block_batch=32,
                      weight_dtype=jnp.bfloat16):
    """x: (N, C, H, W) float32 (PyTorch NCHW). Returns (N, output_dim)."""
    N, C, Hs, Ws = x.shape
    E = C
    HW = Hs * Ws
    D = E // num_heads
    O = params["wc"].shape[0]
    f32 = jnp.float32
    wdt = jnp.dtype(weight_dtype)

    # ---- batch tiling: >= 2 grid steps when N > 8 (v7x: shard across 2 TCs),
    #      larger sublane-aligned tiles on v5e/v6e to amortise per-step work.
    if N <= 8:
        bt = N
    else:
        bt = min(block_batch, (N + 1) // 2)
        bt = max(8, (bt // 8) * 8)
    n_pad = -(-N // bt) * bt
    R = bt * HW

    # ---- lane-dense output padding
    o_pad = -(-O // 128) * 128

    # ---- wrapper glue: NCHW -> (N*HW, E) relayout, cast to the MXU compute dtype
    xt = x.reshape(N, C, HW).transpose(0, 2, 1).reshape(N * HW, E)
    if n_pad != N:
        xt = jnp.concatenate(
            [xt, jnp.zeros(((n_pad - N) * HW, E), xt.dtype)], axis=0)
    xt = xt.astype(wdt)

    pos = params["pos"].astype(f32)
    pos0 = pos[0:1]                                       # (1, E) f32
    posr_t = jnp.tile(pos[1:], (bt, 1)).astype(wdt)       # (R, E) pre-tiled per batch

    # ---- compile-time selector matrices (exact 0/1, fed as single-buffered consts)
    rows = np.arange(R)
    rsel_np = (rows[:, None] // HW == np.arange(bt)[None, :]).astype(np.float32)
    seg_np = (np.arange(E)[:, None] // D ==
              np.arange(num_heads)[None, :]).astype(np.float32)
    rsel = jnp.asarray(rsel_np, dtype=wdt)                # (R, bt)
    rselT = jnp.asarray(rsel_np.T, dtype=wdt)             # (bt, R)
    seg = jnp.asarray(seg_np, dtype=wdt)                  # (E, nh)
    segT = jnp.asarray(seg_np.T, dtype=wdt)               # (nh, E)

    # ---- weights: fold 1/sqrt(D) into Wq/bq; lane-pad Wc/bc; biases stay f32
    scale = 1.0 / float(D) ** 0.5
    wq = (params["wq"] * scale).astype(wdt)
    bq = (params["bq"] * scale).reshape(1, E).astype(f32)
    wk = params["wk"].astype(wdt)
    bk = params["bk"].reshape(1, E).astype(f32)
    wv = params["wv"].astype(wdt)
    bv = params["bv"].reshape(1, E).astype(f32)
    wc = params["wc"]
    bc = params["bc"]
    if o_pad != O:
        wc = jnp.concatenate([wc, jnp.zeros((o_pad - O, E), wc.dtype)], axis=0)
        bc = jnp.concatenate([bc, jnp.zeros((o_pad - O,), bc.dtype)], axis=0)
    wc = wc.astype(wdt)
    bc = bc.reshape(1, o_pad).astype(f32)

    # ---- explicit VMEM budget: single-buffered weights/consts + double-buffered
    #      x/out blocks + in-kernel temporaries, with headroom.
    wb = wdt.itemsize
    need = ((3 * E * E + o_pad * E) * wb            # Wq/Wk/Wv + Wc (Buffered(1))
            + R * E * wb                            # pre-tiled positional embedding
            + 2 * (R * bt + E * num_heads) * wb     # selectors
            + (4 * E + o_pad) * 4                   # pos0 + biases (f32)
            + 2 * R * E * wb                        # x block (double-buffered)
            + 2 * bt * o_pad * 4                    # out block (double-buffered)
            + 6 * R * E * 4)                        # temporaries (generous)
    vmem_limit = int(min(max(int(need * 1.25) + (8 << 20), 32 << 20), 100 << 20))

    def const(shape):
        return pl.BlockSpec(shape, lambda b: (0,) * len(shape),
                            pipeline_mode=pl.Buffered(1))

    out = pl.pallas_call(
        _attnpool_kernel,
        out_shape=jax.ShapeDtypeStruct((n_pad, o_pad), x.dtype),
        grid_spec=pltpu.PrefetchScalarGridSpec(
            num_scalar_prefetch=0,
            grid=(n_pad // bt,),
            in_specs=[
                pl.BlockSpec((R, E), lambda b: (b, 0)),  # x: the only streamed input
                const((1, E)),           # pos[0]
                const((R, E)),           # pos[1:], pre-tiled to the batch tile
                const((R, bt)),          # rsel
                const((bt, R)),          # rselT
                const((E, num_heads)),   # seg
                const((num_heads, E)),   # segT
                const((E, E)),           # Wq (pre-scaled)
                const((E, E)),           # Wk
                const((E, E)),           # Wv
                const((1, E)),           # bq (pre-scaled)
                const((1, E)),           # bk
                const((1, E)),           # bv
                const((o_pad, E)),       # Wc (lane-padded)
                const((1, o_pad)),       # bc (lane-padded)
            ],
            out_specs=pl.BlockSpec((bt, o_pad), lambda b: (b, 0)),
        ),
        compiler_params=pltpu.CompilerParams(
            dimension_semantics=("parallel",),
            vmem_limit_bytes=vmem_limit),
    )(xt, pos0, posr_t, rsel, rselT, seg, segT,
      wq, wk, wv, bq, bk, bv, wc, bc)

    return out[:N, :O]


def attention_pool_2d_ref(x, params, num_heads):
    """Pure-JAX reference matching F.multi_head_attention_forward semantics."""
    N, C, H, W = x.shape
    E = C
    D = E // num_heads
    t = x.reshape(N, C, H * W).transpose(2, 0, 1)
    t = jnp.concatenate([t.mean(axis=0, keepdims=True), t], axis=0)
    t = t + params["pos"][:, None, :]
    tokens = t.transpose(1, 0, 2)                  # (N, L, E)
    q = tokens @ params["wq"].T + params["bq"]
    k = tokens @ params["wk"].T + params["bk"]
    v = tokens @ params["wv"].T + params["bv"]
    L = tokens.shape[1]
    qh = q.reshape(N, L, num_heads, D).transpose(0, 2, 1, 3) / (D ** 0.5)
    kh = k.reshape(N, L, num_heads, D).transpose(0, 2, 1, 3)
    vh = v.reshape(N, L, num_heads, D).transpose(0, 2, 1, 3)
    s = jnp.einsum("nhld,nhmd->nhlm", qh, kh)
    p = jax.nn.softmax(s, axis=-1)
    o = jnp.einsum("nhlm,nhmd->nhld", p, vh)
    o = o.transpose(0, 2, 1, 3).reshape(N, L, E)
    out = o @ params["wc"].T + params["bc"]
    return out[:, 0, :]


def make_params(key, spacial_dim, embed_dim, output_dim):
    L = spacial_dim ** 2 + 1
    ks = jax.random.split(key, 9)
    def lin_w(k, out_f, in_f):
        bound = 1.0 / np.sqrt(in_f)
        return jax.random.uniform(k, (out_f, in_f), jnp.float32, -bound, bound)
    def lin_b(k, out_f, in_f):
        bound = 1.0 / np.sqrt(in_f)
        return jax.random.uniform(k, (out_f,), jnp.float32, -bound, bound)
    return {
        "pos": jax.random.normal(ks[0], (L, embed_dim), jnp.float32)
               / embed_dim ** 0.5,
        "wq": lin_w(ks[1], embed_dim, embed_dim),
        "bq": lin_b(ks[2], embed_dim, embed_dim),
        "wk": lin_w(ks[3], embed_dim, embed_dim),
        "bk": lin_b(ks[4], embed_dim, embed_dim),
        "wv": lin_w(ks[5], embed_dim, embed_dim),
        "bv": lin_b(ks[6], embed_dim, embed_dim),
        "wc": lin_w(ks[7], output_dim, embed_dim),
        "bc": lin_b(ks[8], output_dim, embed_dim),
    }


if __name__ == "__main__":
    # Small shapes: batch=2, channels(embed_dim)=32, spatial=4x4, heads=4, out=64
    batch, embed_dim, spacial_dim, num_heads, output_dim = 2, 32, 4, 4, 64

    key = jax.random.PRNGKey(0)
    kx, kp = jax.random.split(key)
    x = jax.random.normal(kx, (batch, embed_dim, spacial_dim, spacial_dim),
                          jnp.float32)
    params = make_params(kp, spacial_dim, embed_dim, output_dim)
    ref = attention_pool_2d_ref(x, params, num_heads)

    # Default (bf16 MXU operands, f32 accumulation): bf16-grade sanity tolerance.
    out_bf16 = jax.block_until_ready(attention_pool_2d(x, params, num_heads))
    np.testing.assert_allclose(np.asarray(out_bf16), np.asarray(ref),
                               rtol=5e-2, atol=5e-2)

    # f32 weights: tight check of the algorithm (only the approximate EUP
    # reciprocal in the softmax denominator loosens this tolerance).
    out_f32 = jax.block_until_ready(
        attention_pool_2d(x, params, num_heads, weight_dtype=jnp.float32))
    np.testing.assert_allclose(np.asarray(out_f32), np.asarray(ref),
                               rtol=2e-3, atol=2e-3)

    print("KERNEL_OK")
</pallas_src>

<mosaic_0001>
module attributes {stable_mosaic.version = 11 : i64} {
  func.func @_attnpool_kernel(%arg0: i32, %arg1: memref<32x32xbf16, #tpu.memory_space<vmem>>, %arg2: memref<1x32xf32, #tpu.memory_space<vmem>>, %arg3: memref<32x32xbf16, #tpu.memory_space<vmem>>, %arg4: memref<32x2xbf16, #tpu.memory_space<vmem>>, %arg5: memref<2x32xbf16, #tpu.memory_space<vmem>>, %arg6: memref<32x4xbf16, #tpu.memory_space<vmem>>, %arg7: memref<4x32xbf16, #tpu.memory_space<vmem>>, %arg8: memref<32x32xbf16, #tpu.memory_space<vmem>>, %arg9: memref<32x32xbf16, #tpu.memory_space<vmem>>, %arg10: memref<32x32xbf16, #tpu.memory_space<vmem>>, %arg11: memref<1x32xf32, #tpu.memory_space<vmem>>, %arg12: memref<1x32xf32, #tpu.memory_space<vmem>>, %arg13: memref<1x32xf32, #tpu.memory_space<vmem>>, %arg14: memref<128x32xbf16, #tpu.memory_space<vmem>>, %arg15: memref<1x128xf32, #tpu.memory_space<vmem>>, %arg16: memref<2x128xf32, #tpu.memory_space<vmem>>) attributes {dimension_semantics = [#tpu.dimension_semantics<parallel>], iteration_bounds = array<i64: 1>, scalar_prefetch = 0 : i64, scratch_operands = 0 : i64, tpu.core_type = #tpu.core_type<tc>, window_params = [{transform_indices = @transform_0, window_bounds = array<i64: 32, 32>}, {pipeline_mode = #tpu.pipeline_mode<synchronous>, transform_indices = @transform_1, window_bounds = array<i64: 1, 32>}, {pipeline_mode = #tpu.pipeline_mode<synchronous>, transform_indices = @transform_2, window_bounds = array<i64: 32, 32>}, {pipeline_mode = #tpu.pipeline_mode<synchronous>, transform_indices = @transform_3, window_bounds = array<i64: 32, 2>}, {pipeline_mode = #tpu.pipeline_mode<synchronous>, transform_indices = @transform_4, window_bounds = array<i64: 2, 32>}, {pipeline_mode = #tpu.pipeline_mode<synchronous>, transform_indices = @transform_5, window_bounds = array<i64: 32, 4>}, {pipeline_mode = #tpu.pipeline_mode<synchronous>, transform_indices = @transform_6, window_bounds = array<i64: 4, 32>}, {pipeline_mode = #tpu.pipeline_mode<synchronous>, transform_indices = @transform_7, window_bounds = array<i64: 32, 32>}, {pipeline_mode = #tpu.pipeline_mode<synchronous>, transform_indices = @transform_8, window_bounds = array<i64: 32, 32>}, {pipeline_mode = #tpu.pipeline_mode<synchronous>, transform_indices = @transform_9, window_bounds = array<i64: 32, 32>}, {pipeline_mode = #tpu.pipeline_mode<synchronous>, transform_indices = @transform_10, window_bounds = array<i64: 1, 32>}, {pipeline_mode = #tpu.pipeline_mode<synchronous>, transform_indices = @transform_11, window_bounds = array<i64: 1, 32>}, {pipeline_mode = #tpu.pipeline_mode<synchronous>, transform_indices = @transform_12, window_bounds = array<i64: 1, 32>}, {pipeline_mode = #tpu.pipeline_mode<synchronous>, transform_indices = @transform_13, window_bounds = array<i64: 128, 32>}, {pipeline_mode = #tpu.pipeline_mode<synchronous>, transform_indices = @transform_14, window_bounds = array<i64: 1, 128>}, {transform_indices = @transform_15, window_bounds = array<i64: 2, 128>}]} {
    %c0 = arith.constant 0 : index
    %c0_0 = arith.constant 0 : index
    %0 = vector.load %arg1[%c0, %c0_0] : memref<32x32xbf16, #tpu.memory_space<vmem>>, vector<32x32xbf16>
    %c0_1 = arith.constant 0 : index
    %c0_2 = arith.constant 0 : index
    %1 = vector.load %arg4[%c0_1, %c0_2] : memref<32x2xbf16, #tpu.memory_space<vmem>>, vector<32x2xbf16>
    %c0_3 = arith.constant 0 : index
    %c0_4 = arith.constant 0 : index
    %2 = vector.load %arg5[%c0_3, %c0_4] : memref<2x32xbf16, #tpu.memory_space<vmem>>, vector<2x32xbf16>
    %c0_5 = arith.constant 0 : index
    %c0_6 = arith.constant 0 : index
    %3 = vector.load %arg6[%c0_5, %c0_6] : memref<32x4xbf16, #tpu.memory_space<vmem>>, vector<32x4xbf16>
    %c0_7 = arith.constant 0 : index
    %c0_8 = arith.constant 0 : index
    %4 = vector.load %arg7[%c0_7, %c0_8] : memref<4x32xbf16, #tpu.memory_space<vmem>>, vector<4x32xbf16>
    %cst = arith.constant dense<0.000000e+00> : vector<2x32xf32>
    %5 = tpu.matmul %2, %0, %cst {dimension_numbers = #tpu.dot_dimension_numbers<[1], [0], [0], [1], [0, 0, 1, 1], [], []>} : vector<2x32xbf16>, vector<32x32xbf16>, vector<2x32xf32> -> vector<2x32xf32>
    %cst_9 = arith.constant 6.250000e-02 : f32
    %6 = vector.broadcast %cst_9 : f32 to vector<2x32xf32>
    %7 = arith.mulf %5, %6 : vector<2x32xf32>
    %c0_10 = arith.constant 0 : index
    %c0_11 = arith.constant 0 : index
    %8 = vector.load %arg2[%c0_10, %c0_11] : memref<1x32xf32, #tpu.memory_space<vmem>>, vector<1x32xf32>
    %9 = vector.broadcast %8 : vector<1x32xf32> to vector<2x32xf32>
    %10 = arith.addf %7, %9 : vector<2x32xf32>
    %11 = arith.truncf %10 : vector<2x32xf32> to vector<2x32xbf16>
    %c0_12 = arith.constant 0 : index
    %c0_13 = arith.constant 0 : index
    %12 = vector.load %arg3[%c0_12, %c0_13] : memref<32x32xbf16, #tpu.memory_space<vmem>>, vector<32x32xbf16>
    %13 = arith.addf %0, %12 : vector<32x32xbf16>
    %c0_14 = arith.constant 0 : index
    %c0_15 = arith.constant 0 : index
    %14 = vector.load %arg8[%c0_14, %c0_15] : memref<32x32xbf16, #tpu.memory_space<vmem>>, vector<32x32xbf16>
    %cst_16 = arith.constant dense<0.000000e+00> : vector<2x32xf32>
    %15 = tpu.matmul %11, %14, %cst_16 {dimension_numbers = #tpu.dot_dimension_numbers<[1], [1], [0], [0], [0, 0, 1, 0], [], []>} : vector<2x32xbf16>, vector<32x32xbf16>, vector<2x32xf32> -> vector<2x32xf32>
    %c0_17 = arith.constant 0 : index
    %c0_18 = arith.constant 0 : index
    %16 = vector.load %arg11[%c0_17, %c0_18] : memref<1x32xf32, #tpu.memory_space<vmem>>, vector<1x32xf32>
    %17 = vector.broadcast %16 : vector<1x32xf32> to vector<2x32xf32>
    %18 = arith.addf %15, %17 : vector<2x32xf32>
    %19 = arith.truncf %18 : vector<2x32xf32> to vector<2x32xbf16>
    %c0_19 = arith.constant 0 : index
    %c0_20 = arith.constant 0 : index
    %20 = vector.load %arg9[%c0_19, %c0_20] : memref<32x32xbf16, #tpu.memory_space<vmem>>, vector<32x32xbf16>
    %cst_21 = arith.constant dense<0.000000e+00> : vector<2x32xf32>
    %21 = tpu.matmul %11, %20, %cst_21 {dimension_numbers = #tpu.dot_dimension_numbers<[1], [1], [0], [0], [0, 0, 1, 0], [], []>} : vector<2x32xbf16>, vector<32x32xbf16>, vector<2x32xf32> -> vector<2x32xf32>
    %c0_22 = arith.constant 0 : index
    %c0_23 = arith.constant 0 : index
    %22 = vector.load %arg12[%c0_22, %c0_23] : memref<1x32xf32, #tpu.memory_space<vmem>>, vector<1x32xf32>
    %23 = vector.broadcast %22 : vector<1x32xf32> to vector<2x32xf32>
    %24 = arith.addf %21, %23 : vector<2x32xf32>
    %25 = arith.truncf %24 : vector<2x32xf32> to vector<2x32xbf16>
    %c0_24 = arith.constant 0 : index
    %c0_25 = arith.constant 0 : index
    %26 = vector.load %arg9[%c0_24, %c0_25] : memref<32x32xbf16, #tpu.memory_space<vmem>>, vector<32x32xbf16>
    %cst_26 = arith.constant dense<0.000000e+00> : vector<32x32xf32>
    %27 = tpu.matmul %13, %26, %cst_26 {dimension_numbers = #tpu.dot_dimension_numbers<[1], [1], [0], [0], [0, 0, 1, 0], [], []>} : vector<32x32xbf16>, vector<32x32xbf16>, vector<32x32xf32> -> vector<32x32xf32>
    %c0_27 = arith.constant 0 : index
    %c0_28 = arith.constant 0 : index
    %28 = vector.load %arg12[%c0_27, %c0_28] : memref<1x32xf32, #tpu.memory_space<vmem>>, vector<1x32xf32>
    %29 = vector.broadcast %28 : vector<1x32xf32> to vector<32x32xf32>
    %30 = arith.addf %27, %29 : vector<32x32xf32>
    %31 = arith.truncf %30 : vector<32x32xf32> to vector<32x32xbf16>
    %32 = arith.mulf %19, %25 : vector<2x32xbf16>
    %cst_29 = arith.constant dense<0.000000e+00> : vector<2x4xf32>
    %33 = tpu.matmul %32, %3, %cst_29 {dimension_numbers = #tpu.dot_dimension_numbers<[1], [0], [0], [1], [0, 0, 1, 1], [], []>} : vector<2x32xbf16>, vector<32x4xbf16>, vector<2x4xf32> -> vector<2x4xf32>
    %cst_30 = arith.constant dense<0.000000e+00> : vector<32x32xf32>
    %34 = tpu.matmul %1, %19, %cst_30 {dimension_numbers = #tpu.dot_dimension_numbers<[1], [0], [0], [1], [0, 0, 1, 1], [], []>} : vector<32x2xbf16>, vector<2x32xbf16>, vector<32x32xf32> -> vector<32x32xf32>
    %35 = arith.truncf %34 : vector<32x32xf32> to vector<32x32xbf16>
    %36 = arith.mulf %35, %31 : vector<32x32xbf16>
    %cst_31 = arith.constant dense<0.000000e+00> : vector<32x4xf32>
    %37 = tpu.matmul %36, %3, %cst_31 {dimension_numbers = #tpu.dot_dimension_numbers<[1], [0], [0], [1], [0, 0, 1, 1], [], []>} : vector<32x32xbf16>, vector<32x4xbf16>, vector<32x4xf32> -> vector<32x4xf32>
    %38 = vector.shape_cast %37 : vector<32x4xf32> to vector<2x16x4xf32>
    %cst_32 = arith.constant dense<0xFF800000> : vector<2x4xf32>
    %39 = vector.multi_reduction <maximumf>, %38, %cst_32 [1] : vector<2x16x4xf32> to vector<2x4xf32>
    %40 = arith.maximumf %33, %39 : vector<2x4xf32>
    %41 = arith.subf %33, %40 : vector<2x4xf32>
    %42 = math.exp %41 : vector<2x4xf32>
    %43 = vector.shape_cast %40 : vector<2x4xf32> to vector<2x1x4xf32>
    %44 = vector.broadcast %43 : vector<2x1x4xf32> to vector<2x16x4xf32>
    %45 = arith.subf %38, %44 : vector<2x16x4xf32>
    %46 = math.exp %45 : vector<2x16x4xf32>
    %cst_33 = arith.constant dense<0.000000e+00> : vector<2x4xf32>
    %47 = vector.multi_reduction <add>, %46, %cst_33 [1] : vector<2x16x4xf32> to vector<2x4xf32>
    %48 = arith.addf %42, %47 : vector<2x4xf32>
    %49 = tpu.reciprocal %48 {approx = true} : vector<2x4xf32> -> vector<2x4xf32>
    %50 = arith.mulf %42, %49 : vector<2x4xf32>
    %51 = arith.truncf %50 : vector<2x4xf32> to vector<2x4xbf16>
    %52 = vector.shape_cast %49 : vector<2x4xf32> to vector<2x1x4xf32>
    %53 = vector.broadcast %52 : vector<2x1x4xf32> to vector<2x16x4xf32>
    %54 = arith.mulf %46, %53 : vector<2x16x4xf32>
    %55 = vector.shape_cast %54 : vector<2x16x4xf32> to vector<32x4xf32>
    %56 = arith.truncf %55 : vector<32x4xf32> to vector<32x4xbf16>
    %c0_34 = arith.constant 0 : index
    %c0_35 = arith.constant 0 : index
    %57 = vector.load %arg10[%c0_34, %c0_35] : memref<32x32xbf16, #tpu.memory_space<vmem>>, vector<32x32xbf16>
    %cst_36 = arith.constant dense<0.000000e+00> : vector<2x32xf32>
    %58 = tpu.matmul %11, %57, %cst_36 {dimension_numbers = #tpu.dot_dimension_numbers<[1], [1], [0], [0], [0, 0, 1, 0], [], []>} : vector<2x32xbf16>, vector<32x32xbf16>, vector<2x32xf32> -> vector<2x32xf32>
    %c0_37 = arith.constant 0 : index
    %c0_38 = arith.constant 0 : index
    %59 = vector.load %arg13[%c0_37, %c0_38] : memref<1x32xf32, #tpu.memory_space<vmem>>, vector<1x32xf32>
    %60 = vector.broadcast %59 : vector<1x32xf32> to vector<2x32xf32>
    %61 = arith.addf %58, %60 : vector<2x32xf32>
    %c0_39 = arith.constant 0 : index
    %c0_40 = arith.constant 0 : index
    %62 = vector.load %arg10[%c0_39, %c0_40] : memref<32x32xbf16, #tpu.memory_space<vmem>>, vector<32x32xbf16>
    %cst_41 = arith.constant dense<0.000000e+00> : vector<32x32xf32>
    %63 = tpu.matmul %13, %62, %cst_41 {dimension_numbers = #tpu.dot_dimension_numbers<[1], [1], [0], [0], [0, 0, 1, 0], [], []>} : vector<32x32xbf16>, vector<32x32xbf16>, vector<32x32xf32> -> vector<32x32xf32>
    %c0_42 = arith.constant 0 : index
    %c0_43 = arith.constant 0 : index
    %64 = vector.load %arg13[%c0_42, %c0_43] : memref<1x32xf32, #tpu.memory_space<vmem>>, vector<1x32xf32>
    %65 = vector.broadcast %64 : vector<1x32xf32> to vector<32x32xf32>
    %66 = arith.addf %63, %65 : vector<32x32xf32>
    %67 = arith.truncf %66 : vector<32x32xf32> to vector<32x32xbf16>
    %cst_44 = arith.constant dense<0.000000e+00> : vector<32x32xf32>
    %68 = tpu.matmul %56, %4, %cst_44 {dimension_numbers = #tpu.dot_dimension_numbers<[1], [0], [0], [1], [0, 0, 1, 1], [], []>} : vector<32x4xbf16>, vector<4x32xbf16>, vector<32x32xf32> -> vector<32x32xf32>
    %69 = arith.truncf %68 : vector<32x32xf32> to vector<32x32xbf16>
    %70 = arith.mulf %69, %67 : vector<32x32xbf16>
    %cst_45 = arith.constant dense<0.000000e+00> : vector<2x32xf32>
    %71 = tpu.matmul %51, %4, %cst_45 {dimension_numbers = #tpu.dot_dimension_numbers<[1], [0], [0], [1], [0, 0, 1, 1], [], []>} : vector<2x4xbf16>, vector<4x32xbf16>, vector<2x32xf32> -> vector<2x32xf32>
    %72 = arith.mulf %71, %61 : vector<2x32xf32>
    %cst_46 = arith.constant dense<0.000000e+00> : vector<2x32xf32>
    %73 = tpu.matmul %2, %70, %cst_46 {dimension_numbers = #tpu.dot_dimension_numbers<[1], [0], [0], [1], [0, 0, 1, 1], [], []>} : vector<2x32xbf16>, vector<32x32xbf16>, vector<2x32xf32> -> vector<2x32xf32>
    %74 = arith.addf %72, %73 : vector<2x32xf32>
    %75 = arith.truncf %74 : vector<2x32xf32> to vector<2x32xbf16>
    %c0_47 = arith.constant 0 : index
    %c0_48 = arith.constant 0 : index
    %76 = vector.load %arg14[%c0_47, %c0_48] : memref<128x32xbf16, #tpu.memory_space<vmem>>, vector<128x32xbf16>
    %cst_49 = arith.constant dense<0.000000e+00> : vector<2x128xf32>
    %77 = tpu.matmul %75, %76, %cst_49 {dimension_numbers = #tpu.dot_dimension_numbers<[1], [1], [0], [0], [0, 0, 1, 0], [], []>} : vector<2x32xbf16>, vector<128x32xbf16>, vector<2x128xf32> -> vector<2x128xf32>
    %c0_50 = arith.constant 0 : index
    %c0_51 = arith.constant 0 : index
    %78 = vector.load %arg15[%c0_50, %c0_51] : memref<1x128xf32, #tpu.memory_space<vmem>>, vector<1x128xf32>
    %79 = vector.broadcast %78 : vector<1x128xf32> to vector<2x128xf32>
    %80 = arith.addf %77, %79 : vector<2x128xf32>
    %c0_52 = arith.constant 0 : index
    %c0_53 = arith.constant 0 : index
    %81 = vector.load %arg16[%c0_52, %c0_53] : memref<2x128xf32, #tpu.memory_space<vmem>>, vector<2x128xf32>
    tpu.vector_store %arg16[%c0_52, %c0_53], %80 {strides = array<i32>} : memref<2x128xf32, #tpu.memory_space<vmem>>, vector<2x128xf32>,
    return
  }
  func.func @transform_0(%arg0: i32) -> (i32, i32) {
    %c0_i32 = arith.constant 0 : i32
    %c0_i32_0 = arith.constant 0 : i32
    return %arg0, %c0_i32 : i32, i32
  }
  func.func @transform_1(%arg0: i32) -> (i32, i32) {
    %c0_i32 = arith.constant 0 : i32
    %c0_i32_0 = arith.constant 0 : i32
    %c0_i32_1 = arith.constant 0 : i32
    return %c0_i32, %c0_i32_0 : i32, i32
  }
  func.func @transform_2(%arg0: i32) -> (i32, i32) {
    %c0_i32 = arith.constant 0 : i32
    %c0_i32_0 = arith.constant 0 : i32
    %c0_i32_1 = arith.constant 0 : i32
    return %c0_i32, %c0_i32_0 : i32, i32
  }
  func.func @transform_3(%arg0: i32) -> (i32, i32) {
    %c0_i32 = arith.constant 0 : i32
    %c0_i32_0 = arith.constant 0 : i32
    %c0_i32_1 = arith.constant 0 : i32
    return %c0_i32, %c0_i32_0 : i32, i32
  }
  func.func @transform_4(%arg0: i32) -> (i32, i32) {
    %c0_i32 = arith.constant 0 : i32
    %c0_i32_0 = arith.constant 0 : i32
    %c0_i32_1 = arith.constant 0 : i32
    return %c0_i32, %c0_i32_0 : i32, i32
  }
  func.func @transform_5(%arg0: i32) -> (i32, i32) {
    %c0_i32 = arith.constant 0 : i32
    %c0_i32_0 = arith.constant 0 : i32
    %c0_i32_1 = arith.constant 0 : i32
    return %c0_i32, %c0_i32_0 : i32, i32
  }
  func.func @transform_6(%arg0: i32) -> (i32, i32) {
    %c0_i32 = arith.constant 0 : i32
    %c0_i32_0 = arith.constant 0 : i32
    %c0_i32_1 = arith.constant 0 : i32
    return %c0_i32, %c0_i32_0 : i32, i32
  }
  func.func @transform_7(%arg0: i32) -> (i32, i32) {
    %c0_i32 = arith.constant 0 : i32
    %c0_i32_0 = arith.constant 0 : i32
    %c0_i32_1 = arith.constant 0 : i32
    return %c0_i32, %c0_i32_0 : i32, i32
  }
  func.func @transform_8(%arg0: i32) -> (i32, i32) {
    %c0_i32 = arith.constant 0 : i32
    %c0_i32_0 = arith.constant 0 : i32
    %c0_i32_1 = arith.constant 0 : i32
    return %c0_i32, %c0_i32_0 : i32, i32
  }
  func.func @transform_9(%arg0: i32) -> (i32, i32) {
    %c0_i32 = arith.constant 0 : i32
    %c0_i32_0 = arith.constant 0 : i32
    %c0_i32_1 = arith.constant 0 : i32
    return %c0_i32, %c0_i32_0 : i32, i32
  }
  func.func @transform_10(%arg0: i32) -> (i32, i32) {
    %c0_i32 = arith.constant 0 : i32
    %c0_i32_0 = arith.constant 0 : i32
    %c0_i32_1 = arith.constant 0 : i32
    return %c0_i32, %c0_i32_0 : i32, i32
  }
  func.func @transform_11(%arg0: i32) -> (i32, i32) {
    %c0_i32 = arith.constant 0 : i32
    %c0_i32_0 = arith.constant 0 : i32
    %c0_i32_1 = arith.constant 0 : i32
    return %c0_i32, %c0_i32_0 : i32, i32
  }
  func.func @transform_12(%arg0: i32) -> (i32, i32) {
    %c0_i32 = arith.constant 0 : i32
    %c0_i32_0 = arith.constant 0 : i32
    %c0_i32_1 = arith.constant 0 : i32
    return %c0_i32, %c0_i32_0 : i32, i32
  }
  func.func @transform_13(%arg0: i32) -> (i32, i32) {
    %c0_i32 = arith.constant 0 : i32
    %c0_i32_0 = arith.constant 0 : i32
    %c0_i32_1 = arith.constant 0 : i32
    return %c0_i32, %c0_i32_0 : i32, i32
  }
  func.func @transform_14(%arg0: i32) -> (i32, i32) {
    %c0_i32 = arith.constant 0 : i32
    %c0_i32_0 = arith.constant 0 : i32
    %c0_i32_1 = arith.constant 0 : i32
    return %c0_i32, %c0_i32_0 : i32, i32
  }
  func.func @transform_15(%arg0: i32) -> (i32, i32) {
    %c0_i32 = arith.constant 0 : i32
    %c0_i32_0 = arith.constant 0 : i32
    return %arg0, %c0_i32 : i32, i32
  }
}

</mosaic_0001>

<bundles_post_ra>
// kernel: tpu_custom_call.1
= control target key start
LH: loop header
LB: loop body
LE: loop exit
PB: predicated region body
PF: predicated region fallthrough
CT: control target
= control target key end

     0   :  { %v1347_v2 = vmov 0.0   ;;  %vm1348_vm0 = vmmov 0   ;;  %vm78_vm1 = vcmask 261120   ;;  %s1640_s0 = inlined_call_operand.vmem [shape: bf16[32,32], index: 0, kind: input, shape index: {}]   ;;  %s1641_s1 = inlined_call_operand.vmem [shape: f32[1,32], index: 1, kind: input, shape index: {}]   ;;  %s1642_s2 = inlined_call_operand.vmem [shape: bf16[32,32], index: 2, kind: input, shape index: {}]   ;;  %s1643_s3 = inlined_call_operand.vmem [shape: bf16[32,2], index: 3, kind: input, shape index: {}]   ;;  %s1644_s4 = inlined_call_operand.vmem [shape: bf16[2,32], index: 4, kind: input, shape index: {}]   ;;  %s1645_s5 = inlined_call_operand.vmem [shape: bf16[32,4], index: 5, kind: input, shape index: {}]   ;;  %s1646_s6 = inlined_call_operand.vmem [shape: bf16[4,32], index: 6, kind: input, shape index: {}]   ;;  %s1647_s7 = inlined_call_operand.vmem [shape: bf16[32,32], index: 7, kind: input, shape index: {}]   ;;  %s1648_s8 = inlined_call_operand.vmem [shape: bf16[32,32], index: 8, kind: input, shape index: {}]   ;;  %s1649_s9 = inlined_call_operand.vmem [shape: bf16[32,32], index: 9, kind: input, shape index: {}]   ;;  %s1650_s10 = inlined_call_operand.vmem [shape: f32[1,32], index: 10, kind: input, shape index: {}]   ;;  %s1651_s11 = inlined_call_operand.vmem [shape: f32[1,32], index: 11, kind: input, shape index: {}]   ;;  %s1652_s12 = inlined_call_operand.vmem [shape: f32[1,32], index: 12, kind: input, shape index: {}]   ;;  %s1653_s13 = inlined_call_operand.vmem [shape: bf16[128,32], index: 13, kind: input, shape index: {}]   ;;  %s1654_s14 = inlined_call_operand.vmem [shape: f32[1,128], index: 14, kind: input, shape index: {}]   ;;  %s1655_s15 = inlined_call_operand.hbm [shape: f32[2,128], index: 15, kind: output, shape index: {}]  }
   0x1   :  { %v54_v0 = vld [vmem:[%s1640_s0 + $0x8] sm:$0xf]  ;;  %v55_v1 = vld [vmem:[%s1640_s0 + $0xc] sm:$0xf]  ;;  %1173 = vmatprep.subr.bf16.mxu0 %v1347_v2  ;;  %v52_v6 = vld [vmem:[%s1640_s0] sm:$0xf]  ;;  %1177 = vmatprep.mubr.msk.bf16.mxu0 %vm1348_vm0, %v1347_v2 }
   0x2   :  { %v1082_v3 = vcombine.low %v54_v0, %v55_v1  ;;  %v134_v4 = vld [vmem:[%s1642_s2 + $0x8] sm:$0xf]  ;;  %v135_v5 = vld [vmem:[%s1642_s2 + $0xc] sm:$0xf]  ;;  %v53_v9 = vld [vmem:[%s1640_s0 + $0x4] sm:$0xf] }
   0x3   :  { %v138_v7 = vadd.bf16 %v134_v4, %v54_v0  ;;  %v139_v8 = vadd.bf16 %v135_v5, %v55_v1  ;;  %v1081_v10 = vcombine.low %v52_v6, %v53_v9  ;;  %v1295_v11 = vld [vmem:[%s1647_s7 + $0x8] sm:$0xff]   ;;  %v1461_v13 = vld [vmem:[%s1644_s4] sm:$0x1] }
   0x4   :  { %1174 = vmatpush3.bf16.msra.mxu0 %v1082_v3  ;;  %v168_v14 = vsel %vm78_vm1, %v1295_v11, 0  ;;  %v1296_v15 = vld [vmem:[%s1647_s7] sm:$0xff]  }
   0x5   :  { %v1455_v12 = vcombine.low %v138_v7, %v139_v8  ;;  %1175 = vmatprep.subr.bf16.mxu0 %v1347_v2  ;;  %v165_v16 = vsel %vm78_vm1, %v1296_v15, 0 }
   0x8   :  { %1176 = vmatpush3.bf16.msra.mxu0 %v1081_v10 }
   0x9   :  { %1181 = vmatprep.subr.bf16.mxu0 %v1347_v2 }
   0xb   :  { %1178 = vmatmul.mubr.msk.bf16.vlgmr.msra.gmra.mxu0 %vm78_vm1, %v1461_v13 }
   0xc   :  { %1182 = vmatpush3.bf16.xpose.msra.mxu0 %v168_v14  ;;  %1185 = vmatprep.mubr.msk.bf16.mxu0 %vm1348_vm0, %v1347_v2 }
   0xd   :  { %1183 = vmatprep.subr.bf16.mxu0 %v1347_v2 }
   0xe   :  { %20 = vsyncpa [#allocation3], 0  ;;  %v1084_v18 = vld [vmem:[%s1641_s1] ss:$0 sm:$0xff]  ;;  %v1297_v20 = vld [vmem:[%s1648_s8 + $0x8] sm:$0xff]   ;;  %vm412_vm2 = vcmask 15360  }
   0xf   :  { %v236_v25 = vsel %vm78_vm1, %v1297_v20, 0  ;;  %v1298_v27 = vld [vmem:[%s1648_s8] sm:$0xff]   ;;  %v1301_v35 = vld [vmem:[%s1645_s5 + $0x8] sm:$0xff]   ;;  %vm419_vm3 = vcmask 1040384   ;;  %vm793_vm4 = vcmask 1041408   ;;  %vm531_vm5 = vcmask 31744  }
  0x10   :  { %v233_v28 = vsel %vm78_vm1, %v1298_v27, 0  ;;  %v132_v29 = vld [vmem:[%s1642_s2] sm:$0xf]  ;;  %v133_v30 = vld [vmem:[%s1642_s2 + $0x4] sm:$0xf]  ;;  %v1300_v44 = vld [vmem:[%s1643_s3 + $0x8] sm:$0xff]  }
  0x11   :  { %v136_v31 = vadd.bf16 %v132_v29, %v52_v6  ;;  %v137_v32 = vadd.bf16 %v133_v30, %v53_v9  ;;  %v1299_v34 = vld [vmem:[%s1643_s3] sm:$0xff]   ;;  %v1303_v46 = vld [vmem:[%s1649_s9 + $0x8] sm:$0xff]   ;;  %vm552_vm6 = vcmask 1041409   ;;  %s1350_s0 = smov [#allocation2]  }
  0x12   :  { %1215 = vmatprep.mubr.msk.bf16.mxu1 %vm412_vm2, %v1299_v34  ;;  %v1302_v36 = vld [vmem:[%s1645_s5] sm:$0xff]   ;;  %v694_v54 = vsel %vm78_vm1, %v1303_v46, 0  ;;  %s1073_s5 = sshll.u32 %s1350_s0, 4  ;;  %s1074_s5 = int_to_ptr.vmem [resolvable:$true] %s1073_s5 }
  0x13   :  { %v1504_v33 = vcombine.low %v136_v31, %v137_v32  ;;  %v1085_v37 = vld [vmem:[%s1650_s10] ss:$0 sm:$0xff]  ;;  %s1325_s10 = scalar_lea.vmem %s1074_s5, 32  ;;  %p1330_p1 = scmp.lt.s32.totalorder %s1074_s5, %s1074_s5 }
  0x14   :  { %1184 = vmatpush3.bf16.xpose.msra.mxu0 %v165_v16  ;;  %v1089_v47 = vld [vmem:[%s1651_s11] ss:$0 sm:$0xff]  ;;  %p1326_p0 = scmp.ne.s32.totalorder %s1074_s5, %s1325_s10  ;;  %p1331_p2 = scmp.lt.s32.totalorder %s1325_s10, %s1325_s10 }
  0x15   :  { %1189 = vmatprep.subr.bf16.mxu0 %v1347_v2  ;;  %v1304_v56 = vld [vmem:[%s1649_s9] sm:$0xff]  }
  0x16   :  { %v691_v57 = vsel %vm78_vm1, %v1304_v56, 0  ;;  %p1332_p3 = por %p1331_p2, %p1330_p1 }
  0x18   :  { %p1333_p4 = pnand %p1332_p3, %p1326_p0 }
  0xcb   :  { %v116_v17 = vpop.f32.mrf.mxu0 }
  0xcc   :  { %v122_v19 = vmul.f32 0.0625, %v116_v17 }
  0xcd   :  { %v1179_v21 = vpop.f32.mrf.mxu0 }
  0xce   :  { %v130_v22 = vadd.f32 %v1084_v18, %v122_v19 }
  0xcf   :  { %v119_v23 = vpop.f32.mrf.mxu0 }
  0xd0   :  { %v1481_v24 = vpack.c.bf16 %v130_v22, %v130_v22  ;;  %v65_v23 = vld [vmem:[%s1646_s6] sm:$0x3] }
  0xd1   :  { %v1180_v26 = vpop.f32.mrf.mxu0 }
  0xd2   :  { %1186 = vmatmul.mubr.msk.bf16.vlgmr.msra.gmra.mxu0 %vm78_vm1, %v1481_v24 }
  0xd3   :  { %1190 = vmatpush3.bf16.xpose.msra.mxu0 %v236_v25  ;;  %1193 = vmatprep.mubr.msk.bf16.mxu0 %vm1348_vm0, %v1347_v2 }
  0xd4   :  { %1191 = vmatprep.subr.bf16.mxu0 %v1347_v2 }
  0xdb   :  { %1192 = vmatpush3.bf16.xpose.msra.mxu0 %v233_v28 }
  0xdc   :  { %1283 = vmatprep.subr.msk.bf16.mxu0 %vm78_vm1, %v1297_v20 }
  0xe2   :  { %1194 = vmatmul.mubr.msk.bf16.vlgmr.msra.gmra.mxu0 %vm78_vm1, %v1481_v24 }
  0xe3   :  { %1198 = vmatpush3.bf16.xpose.msra.mxu0 %v236_v25  ;;  %1201 = vmatprep.mubr.msk.bf16.mxu0 %vm78_vm1, %v1504_v33 }
  0xe4   :  { %1284 = vmatprep.subr.msk.bf16.mxu0 %vm78_vm1, %v1298_v27 }
  0xeb   :  { %1200 = vmatpush3.bf16.xpose.msra.mxu0 %v233_v28 }
  0xec   :  { %1205 = vmatprep.subr.bf16.mxu0 %v1347_v2 }
  0xf2   :  { %1202 = vmatmul.mubr.msk.bf16.vlgmr.msra.gmra.mxu0 %vm78_vm1, %v1455_v12 }
  0xf3   :  { %1209 = vmatprep.mubr.msk.bf16.mxu0 %vm1348_vm0, %v1347_v2  ;;  %1206 = vmatpush3.bf16.msra.mxu0 %v1301_v35 }
  0xf4   :  { %1207 = vmatprep.subr.bf16.mxu0 %v1347_v2 }
  0xf7   :  { %1208 = vmatpush3.bf16.msra.mxu0 %v1302_v36 }
  0xf8   :  { %1227 = vmatprep.subr.bf16.mxu0 %v1347_v2 }
 0x192   :  { %v204_v38 = vpop.f32.mrf.mxu0 }
 0x193   :  { %v205_v39 = vadd.f32 %v1085_v37, %v204_v38 }
 0x194   :  { %v1187_v40 = vpop.f32.mrf.mxu0 }
 0x195   :  { %v210_v41 = vpack.c.bf16 %v205_v39, %v205_v39  ;;  %v1349_v39 = vmov 1966171168  }
 0x196   :  { %v207_v42 = vpop.f32.mrf.mxu0  ;;  %v561_v40 = vunpack.c.l.s4 %v1349_v39 }
 0x197   :  { %1285 = vmatprep.subr.msk.bf16.mxu1 %vm419_vm3, %v210_v41  ;;  %v421_v43 = vsel %vm419_vm3, %v210_v41, 0 }
 0x198   :  { %v1188_v45 = vpop.f32.mrf.mxu0  ;;  %1214 = vmatpush3.bf16.msra.mxu1 %v421_v43 }
 0x199   :  { %1219 = vmatprep.subr.bf16.mxu1 %v1301_v35 }
 0x19b   :  { %1216 = vmatmul.mubr.msk.bf16.vlgmr.msra.gmra.mxu1 %vm412_vm2, %v1300_v44 }
 0x19c   :  { %1220 = vmatpush3.bf16.msra.mxu1 %v1301_v35 }
 0x19d   :  { %1221 = vmatprep.subr.bf16.mxu1 %v1302_v36 }
 0x1a0   :  { %1222 = vmatpush3.bf16.msra.mxu1 %v1302_v36 }
 0x1a1   :  { %1286 = vmatprep.subr.msk.bf16.mxu1 %vm78_vm1, %v1303_v46  ;;  %v562_v46 = vunpack.c.0.s8 %v561_v40 }
 0x1a2   :  { %v272_v48 = vpop.f32.mrf.mxu0 }
 0x1a3   :  { %v273_v49 = vadd.f32 %v1089_v47, %v272_v48 }
 0x1a4   :  { %v1195_v50 = vpop.f32.mrf.mxu0 }
 0x1a5   :  { %v278_v51 = vpack.c.bf16 %v273_v49, %v273_v49 }
 0x1a6   :  { %v275_v52 = vpop.f32.mrf.mxu0 }
 0x1a7   :  { %v346_v53 = vmul.bf16 %v278_v51, %v210_v41  ;;  %v563_v41 = vlaneseq }
 0x1a8   :  { %v1196_v55 = vpop.f32.mrf.mxu0 }
 0x1a9   :  { %1210 = vmatmul.mubr.msk.bf16.vlgmr.msra.gmra.mxu0 %vm78_vm1, %v346_v53 }
 0x1aa   :  { %1228 = vmatpush3.bf16.xpose.msra.mxu0 %v694_v54  ;;  %1231 = vmatprep.mubr.msk.bf16.mxu0 %vm1348_vm0, %v1347_v2 }
 0x1ab   :  { %1229 = vmatprep.subr.bf16.mxu0 %v1347_v2 }
 0x1b2   :  { %1230 = vmatpush3.bf16.xpose.msra.mxu0 %v691_v57  ;;  %v1203_v58 = vpop.f32.mrf.mxu0 }
 0x1b3   :  { %v338_v3 = vadd.f32 %v1203_v58, %v1089_v47  ;;  %1288 = vmatprep.subr.msk.bf16.mxu0 %vm793_vm4, %v65_v23 }
 0x1b4   :  { %v329_v59 = vpop.f32.mrf.mxu0 }
 0x1b5   :  { %v330_v0 = vadd.f32 %v1089_v47, %v329_v59 }
 0x1b6   :  { %v1204_v60 = vpop.f32.mrf.mxu0 }
 0x1b7   :  { %v341_v4 = vadd.f32 %v1204_v60, %v1089_v47 }
 0x1b8   :  { %v332_v61 = vpop.f32.mrf.mxu0 }
 0x1b9   :  { %1232 = vmatmul.mubr.msk.bf16.vlgmr.msra.gmra.mxu0 %vm78_vm1, %v1481_v24  ;;  %v333_v1 = vadd.f32 %v1089_v47, %v332_v61  ;;  %v345_v10 = vpack.c.bf16 %v341_v4, %v338_v3  ;;  %v795_v24 = vsel %vm793_vm4, %v65_v23, 0  ;;  %v564_v47 = vshrl.u32 %v563_v41, 7 }
 0x1ba   :  { %1244 = vmatpush3.bf16.msra.mxu0 %v795_v24 }
 0x1bb   :  { %v344_v8 = vpack.c.bf16 %v333_v1, %v330_v0  ;;  %1255 = vmatprep.subr.bf16.mxu0 %v1347_v2  ;;  %v565_v51 = vsub.s32 %v562_v46, %v564_v47  ;;  %v584_v55 = vsub.s32 0, %v564_v47 }
 0x25b   :  { %v1217_v62 = vpop.f32.mrf.mxu1 }
 0x25d   :  { %v457_v63 = vpop.f32.mrf.mxu1 }
 0x25f   :  { %v1218_v5 = vpop.f32.mrf.mxu1 }
 0x260   :  { %v473_v6 = vpack.c.bf16 %v1218_v5, %v1217_v62 }
 0x261   :  { %v460_v7 = vpop.f32.mrf.mxu1 }
 0x262   :  { %v472_v9 = vpack.c.bf16 %v460_v7, %v457_v63  ;;  %v475_v14 = vmul.bf16 %v473_v6, %v345_v10 }
 0x264   :  { %v474_v11 = vmul.bf16 %v472_v9, %v344_v8 }
 0x266   :  { %1223 = vmatprep.mubr.msk.bf16.mxu1 %vm78_vm1, %v474_v11 }
 0x267   :  { %1224 = vmatmul.mubr.msk.bf16.vlgmr.msra.gmra.mxu1 %vm78_vm1, %v475_v14 }
 0x268   :  { %1236 = vmatpush3.bf16.xpose.msra.mxu1 %v694_v54  ;;  %1239 = vmatprep.mubr.msk.bf16.mxu1 %vm78_vm1, %v1504_v33 }
 0x269   :  { %v1553_v15 = vpop.f32.mrf.mxu0  ;;  %1287 = vmatprep.subr.msk.bf16.mxu1 %vm78_vm1, %v1304_v56 }
 0x26b   :  { %v1211_v16 = vpop.f32.mrf.mxu0 }
 0x26d   :  { %v399_v17 = vpop.f32.mrf.mxu0 }
 0x26f   :  { %v1212_v18 = vpop.f32.mrf.mxu0 }
 0x270   :  { %1238 = vmatpush3.bf16.xpose.msra.mxu1 %v691_v57 }
 0x271   :  { %1249 = vmatprep.subr.bf16.mxu1 %v1347_v2 }
 0x277   :  { %1240 = vmatmul.mubr.msk.bf16.vlgmr.msra.gmra.mxu1 %vm78_vm1, %v1455_v12 }
 0x278   :  { %1251 = vmatprep.mubr.msk.bf16.mxu1 %vm1348_vm0, %v1347_v2  ;;  %1250 = vmatpush3.bf16.msra.mxu1 %v795_v24 }
 0x279   :  { %v1561_v19 = vpop.f32.mrf.mxu0  ;;  %1263 = vmatprep.subr.bf16.mxu1 %v1347_v2 }
 0x27b   :  { %v1233_v20 = vpop.f32.mrf.mxu0 }
 0x27d   :  { %v733_v21 = vpop.f32.mrf.mxu0 }
 0x27f   :  { %v1234_v22 = vpop.f32.mrf.mxu0 }
 0x327   :  { %v1225_v12 = vpop.f32.mrf.mxu1 }
 0x328   :  { %v541_v27 = vsel %vm531_vm5, %v1225_v12, -inf }
 0x329   :  { %v516_v25 = vpop.f32.mrf.mxu1 }
 0x32a   :  { %v532_v31 = vsel %vm531_vm5, %v516_v25, -inf }
 0x32b   :  { %v1226_v26 = vpop.f32.mrf.mxu1 }
 0x32c   :  { %v542_v28 = vsel %vm531_vm5, %v1226_v26, -inf }
 0x32d   :  { %v543_v29 = vmax.f32 %v541_v27, %v542_v28  ;;  %v519_v30 = vpop.f32.mrf.mxu1 }
 0x32e   :  { %v533_v32 = vsel %vm531_vm5, %v519_v30, -inf }
 0x32f   :  { %v544_v33 = vrot.slane %v543_v29, 4  ;;  %v534_v34 = vmax.f32 %v532_v31, %v533_v32 }
 0x331   :  { %v545_v35 = vmax.f32 %v543_v29, %v544_v33  ;;  %v535_v36 = vrot.slane %v534_v34, 4 }
 0x333   :  { %v546_v37 = vrot.slane %v545_v35, 2  ;;  %v536_v38 = vmax.f32 %v534_v34, %v535_v36 }
 0x335   :  { %v547_v42 = vmax.f32 %v545_v35, %v546_v37  ;;  %v537_v43 = vrot.slane %v536_v38, 2 }
 0x337   :  { %v548_v44 = vrot.slane %v547_v42, 1  ;;  %v538_v45 = vmax.f32 %v536_v38, %v537_v43 }
 0x339   :  { %v539_v48 = vrot.slane %v538_v45, 1  ;;  %v549_v49 = vmax.f32 %v547_v42, %v548_v44 }
 0x33b   :  { %v540_v50 = vmax.f32 %v538_v45, %v539_v48 }
 0x33d   :  { %v553_v52 = vsel %vm552_vm6, %v549_v49, %v540_v50  ;;  %v1305_v50 = vld [vmem:[%s1653_s13 + $0x38] sm:$0xff]  }
 0x33e   :  { %v555_v53 = vmax.f32 %v1553_v15, %v553_v52  ;;  %v1306_v52 = vld [vmem:[%s1653_s13 + $0x30] sm:$0xff]  }
 0x340   :  { %v566_v54 = vrot.slane %v555_v53, %v565_v51  ;;  %v556_v6 = vsub.f32 %v1553_v15, %v555_v53  ;;  %v1021_v53 = vsel %vm78_vm1, %v1306_v52, 0 }
 0x342   :  { %v567_v56 = vcombine.high %v566_v54, %v566_v54  ;;  %v574_v57 = vrot.slane %v566_v54, %v565_v51  ;;  %v557_v11 = vmul.f32 1.442695, %v556_v6  ;;  %v1307_v54 = vld [vmem:[%s1653_s13 + $0x28] sm:$0xff]   ;;  %v1106_v6 = vld [vmem:[%s1652_s12] ss:$0 sm:$0xff] }
 0x344   :  { %v581_v58 = vrot.slane %v567_v56, %v565_v51  ;;  %v585_v59 = vrot.slane %v574_v57, %v584_v55  ;;  %v1308_v56 = vld [vmem:[%s1653_s13 + $0x20] sm:$0xff]  }
 0x345   :  { %v1015_v57 = vsel %vm78_vm1, %v1308_v56, 0 }
 0x346   :  { %v589_v60 = vrot.slane %v581_v58, %v584_v55  ;;  %v592_v61 = vsub.f32 %v516_v25, %v585_v59  ;;  %v593_v62 = vsub.f32 %v519_v30, %v585_v59  ;;  %v1309_v58 = vld [vmem:[%s1653_s13 + $0x18] sm:$0xff]  }
 0x347   :  { %v1012_v59 = vsel %vm78_vm1, %v1309_v58, 0 }
 0x348   :  { %v594_v63 = vsub.f32 %v1225_v12, %v589_v60  ;;  %v595_v0 = vsub.f32 %v1226_v26, %v589_v60  ;;  %v596_v1 = vmul.f32 1.442695, %v592_v61  ;;  %v598_v3 = vmul.f32 1.442695, %v593_v62  ;;  %v1310_v60 = vld [vmem:[%s1653_s13 + $0x10] sm:$0xff]   ;;  %v1311_v62 = vld [vmem:[%s1653_s13 + $0x8] sm:$0xff]  }
 0x349   :  { %v1009_v61 = vsel %vm78_vm1, %v1310_v60, 0 }
 0x34a   :  { %1313 = vpow2.f32 %v596_v1  ;;  %v600_v4 = vmul.f32 1.442695, %v594_v63  ;;  %v602_v5 = vmul.f32 1.442695, %v595_v0  ;;  %v1006_v63 = vsel %vm78_vm1, %v1311_v62, 0  ;;  %v1312_v0 = vld [vmem:[%s1653_s13] sm:$0xff]  }
 0x34b   :  { %1315 = vpow2.f32 %v598_v3  ;;  %v1003_v1 = vsel %vm78_vm1, %v1312_v0, 0  ;;  %v1241_v3 = vpop.f32.mrf.mxu1 }
 0x34c   :  { %1317 = vpow2.f32 %v600_v4 }
 0x34d   :  { %1319 = vpow2.f32 %v602_v5  ;;  %v770_v4 = vpop.f32.mrf.mxu1 }
 0x34e   :  { %1321 = vpow2.f32 %v557_v11 }
 0x34f   :  { %v1242_v5 = vpop.f32.mrf.mxu1 }
 0x357   :  { %v1314_v7 = vpop.eup %1313 }
 0x358   :  { %v1316_v8 = vpop.eup %1315  ;;  %v604_v9 = vsel %vm531_vm5, %v1314_v7, 0.0 }
 0x359   :  { %v1318_v10 = vpop.eup %1317  ;;  %v605_v14 = vsel %vm531_vm5, %v1316_v8, 0.0 }
 0x35a   :  { %v1320_v16 = vpop.eup %1319  ;;  %v606_v17 = vadd.f32 %v605_v14, %v604_v9  ;;  %v613_v18 = vsel %vm531_vm5, %v1318_v10, 0.0 }
 0x35b   :  { %v614_v20 = vsel %vm531_vm5, %v1320_v16, 0.0  ;;  %v1322_v32 = vpop.eup %1321 }
 0x35c   :  { %v607_v21 = vrot.slane %v606_v17, 4  ;;  %v615_v22 = vadd.f32 %v614_v20, %v613_v18  ;;  %v779_v18 = vadd.f32 %v1241_v3, %v1106_v6  ;;  %v782_v20 = vadd.f32 %v1242_v5, %v1106_v6 }
 0x35e   :  { %v608_v23 = vadd.f32 %v607_v21, %v606_v17  ;;  %v616_v24 = vrot.slane %v615_v22, 4 }
 0x360   :  { %v609_v15 = vrot.slane %v608_v23, 2  ;;  %v617_v12 = vadd.f32 %v616_v24, %v615_v22  ;;  %v786_v24 = vpack.c.bf16 %v782_v20, %v779_v18 }
 0x362   :  { %v610_v25 = vadd.f32 %v609_v15, %v608_v23  ;;  %v618_v26 = vrot.slane %v617_v12, 2  ;;  %v771_v23 = vadd.f32 %v1106_v6, %v770_v4 }
 0x364   :  { %v611_v27 = vrot.slane %v610_v25, 1  ;;  %v619_v28 = vadd.f32 %v618_v26, %v617_v12 }
 0x366   :  { %v620_v29 = vrot.slane %v619_v28, 1  ;;  %v612_v30 = vadd.f32 %v611_v27, %v610_v25 }
 0x368   :  { %v621_v31 = vadd.f32 %v620_v29, %v619_v28 }
 0x36a   :  { %v624_v33 = vsel %vm552_vm6, %v621_v31, %v612_v30 }
 0x36b   :  { %v626_v34 = vadd.f32 %v1322_v32, %v624_v33 }
 0x36d   :  { %1323 = vrcp.f32 %v626_v34 }
 0x37a   :  { %v1324_v35 = vpop.eup %1323 }
 0x37b   :  { %v628_v36 = vmul.f32 %v1324_v35, %v1322_v32  ;;  %v637_v37 = vrot.slane %v1324_v35, %v565_v51  ;;  %v1116_v35 = vld [vmem:[%s1654_s14] ss:$0 sm:$0xff] }
 0x37d   :  { %v629_v38 = vpack.c.bf16 %v628_v36, %v628_v36  ;;  %v638_v39 = vcombine.high %v637_v37, %v637_v37  ;;  %v645_v40 = vrot.slane %v637_v37, %v565_v51 }
 0x37f   :  { %1252 = vmatmul.mubr.msk.bf16.vlgmr.msra.gmra.mxu1 %vm531_vm5, %v629_v38  ;;  %v656_v41 = vrot.slane %v645_v40, %v584_v55  ;;  %v652_v42 = vrot.slane %v638_v39, %v565_v51  ;;  %v1024_v51 = vsel %vm78_vm1, %v1305_v50, 0 }
 0x380   :  { %1279 = vmatprep.mubr.msk.bf16.mxu1 %vm1348_vm0, %v1347_v2  ;;  %1264 = vmatpush3.bf16.xpose.msra.mxu1 %v1024_v51 }
 0x381   :  { %v663_v43 = vmul.f32 %v1314_v7, %v656_v41  ;;  %v664_v44 = vmul.f32 %v1316_v8, %v656_v41  ;;  %v660_v45 = vrot.slane %v652_v42, %v584_v55  ;;  %1265 = vmatprep.subr.bf16.mxu1 %v1347_v2  ;;  %v1018_v55 = vsel %vm78_vm1, %v1307_v54, 0  ;;  %v773_v7 = vpop.f32.mrf.mxu1 }
 0x382   :  { %v731_v8 = vadd.f32 %v1106_v6, %v1561_v19  ;;  %v774_v15 = vadd.f32 %v1106_v6, %v773_v7 }
 0x383   :  { %v667_v46 = vpack.c.bf16 %v664_v44, %v663_v43  ;;  %v665_v47 = vmul.f32 %v1318_v10, %v660_v45  ;;  %v666_v48 = vmul.f32 %v1320_v16, %v660_v45 }
 0x384   :  { %v785_v28 = vpack.c.bf16 %v774_v15, %v771_v23 }
 0x385   :  { %1245 = vmatprep.mubr.msk.bf16.mxu0 %vm531_vm5, %v667_v46  ;;  %v668_v49 = vpack.c.bf16 %v666_v48, %v665_v47 }
 0x387   :  { %1246 = vmatmul.mubr.msk.bf16.vlgmr.msra.gmra.mxu0 %vm531_vm5, %v668_v49 }
 0x388   :  { %1259 = vmatprep.mubr.msk.bf16.mxu0 %vm1348_vm0, %v1347_v2  ;;  %1266 = vmatpush3.bf16.xpose.msra.mxu1 %v1021_v53 }
 0x389   :  { %1267 = vmatprep.subr.bf16.mxu1 %v1347_v2 }
 0x390   :  { %1268 = vmatpush3.bf16.xpose.msra.mxu1 %v1018_v55 }
 0x391   :  { %1269 = vmatprep.subr.bf16.mxu1 %v1347_v2 }
 0x398   :  { %1270 = vmatpush3.bf16.xpose.msra.mxu1 %v1015_v57 }
 0x399   :  { %1271 = vmatprep.subr.bf16.mxu1 %v1347_v2 }
 0x3a0   :  { %1272 = vmatpush3.bf16.xpose.msra.mxu1 %v1012_v59 }
 0x3a1   :  { %1273 = vmatprep.subr.bf16.mxu1 %v1347_v2 }
 0x3a8   :  { %1274 = vmatpush3.bf16.xpose.msra.mxu1 %v1009_v61 }
 0x3a9   :  { %1275 = vmatprep.subr.bf16.mxu1 %v1347_v2 }
 0x3b0   :  { %1276 = vmatpush3.bf16.xpose.msra.mxu1 %v1006_v63 }
 0x3b1   :  { %1277 = vmatprep.subr.bf16.mxu1 %v1347_v2 }
 0x3b8   :  { %1278 = vmatpush3.bf16.xpose.msra.mxu1 %v1003_v1 }
 0x43f   :  { %v887_v9 = vpop.f32.mrf.mxu1 }
 0x440   :  { %v893_v10 = vmul.f32 %v887_v9, %v731_v8 }
 0x441   :  { %v1253_v11 = vpop.f32.mrf.mxu1 }
 0x443   :  { %v890_v14 = vpop.f32.mrf.mxu1 }
 0x445   :  { %v1254_v16 = vpop.f32.mrf.mxu1 }
 0x447   :  { %v1247_v17 = vpop.f32.mrf.mxu0 }
 0x449   :  { %v831_v21 = vpop.f32.mrf.mxu0 }
 0x44b   :  { %v1248_v22 = vpop.f32.mrf.mxu0 }
 0x44c   :  { %v847_v12 = vpack.c.bf16 %v1248_v22, %v1247_v17 }
 0x44d   :  { %v834_v25 = vpop.f32.mrf.mxu0 }
 0x44e   :  { %v849_v26 = vmul.bf16 %v847_v12, %v786_v24  ;;  %v846_v27 = vpack.c.bf16 %v834_v25, %v831_v21 }
 0x450   :  { %1256 = vmatpush3.bf16.msra.mxu0 %v849_v26  ;;  %v848_v19 = vmul.bf16 %v846_v27, %v785_v28 }
 0x451   :  { %1257 = vmatprep.subr.bf16.mxu0 %v1347_v2 }
 0x454   :  { %1258 = vmatpush3.bf16.msra.mxu0 %v848_v19 }
 0x457   :  { %1260 = vmatmul.mubr.msk.bf16.vlgmr.msra.gmra.mxu0 %vm78_vm1, %v1461_v13 }
 0x517   :  { %v928_v29 = vpop.f32.mrf.mxu0 }
 0x518   :  { %v934_v30 = vadd.f32 %v928_v29, %v893_v10 }
 0x519   :  { %v1261_v31 = vpop.f32.mrf.mxu0 }
 0x51a   :  { %v935_v32 = vpack.c.bf16 %v934_v30, %v934_v30 }
 0x51b   :  { %v931_v33 = vpop.f32.mrf.mxu0 }
 0x51c   :  { %1280 = vmatmul.mubr.msk.bf16.vlgmr.msra.gmra.mxu1 %vm78_vm1, %v935_v32 }
 0x51d   :  { %v1262_v34 = vpop.f32.mrf.mxu0 }
 0x5dc   :  { %v1060_v2 = vpop.f32.mrf.mxu1 }
 0x5dd   :  { %v1061_v36 = vadd.f32 %v1116_v35, %v1060_v2 }
 0x5de   :  { %v1281_v37 = vpop.f32.mrf.mxu1 }
 0x5df   :  { %1066 = vst [vmem:[#allocation2] sm:$0x3] %v1061_v36 }
 0x5e0   :  { %v1063_v13 = vpop.f32.mrf.mxu1 }
 0x5e1   :  { %1336 = shalt.err (!%p1333_p4)
}
 0x5e2   :  { %1076 = dma.vmem_to_hbm [thread:$0]  %s1074_s5, 32, %s1655_s15, [#allocation3]   ;;  %v1282_v38 = vpop.f32.mrf.mxu1 }
 0x5e3   :  { %1345 = dma.done.wait [#allocation3], 32  }
 0x5e4   :  { %1346 = vsyncadd [#allocation3], 4294967264 }
 0x5e5   :  { %1080 = vsyncpa [#allocation3], 1 }

</bundles_post_ra>
